<compile_context>
chip_gen: v7x
topology: tpu7x:2x2x1
jax: 0.10.0
libtpu: 0.0.40
codegen_flags: <defaults>
</compile_context>

<pallas_src>
import functools

import jax
import jax.numpy as jnp
from jax import lax
from jax.experimental import pallas as pl
from jax.experimental.pallas import tpu as pltpu

_LANE = 128
_VMEM_BUDGET = 40 << 20  # conservative per-core budget (v7x has 64 MiB / TensorCore)


def _round_up(x, m):
    return (x + m - 1) // m * m


def prepare_params(w, b, gamma, beta):
    """One-time parameter prep (hoisted out of the per-call hot path).

    w:     (nin, nout)  == torch linear.weight.T
    b:     linear bias; accepted for interface parity but dropped -- training-mode
           BatchNorm's batch-mean subtraction cancels it exactly.
    gamma, beta: BatchNorm affine params, shape (nout,) or (1, nout).
    """
    del b  # exactly cancelled by the BN mean subtraction (training mode)
    nin, nout = w.shape
    gamma = jnp.asarray(gamma, jnp.float32).reshape(1, nout)
    beta = jnp.asarray(beta, jnp.float32).reshape(1, nout)
    n_pad = _round_up(nout, _LANE)
    if n_pad != nout:
        # Zero-padded W columns (+ gamma=1) keep padded features finite
        # (y=0, var=0 -> rsqrt(eps)); they are sliced off after the kernel.
        w = jnp.pad(w, ((0, 0), (0, n_pad - nout)))
        gamma = jnp.pad(gamma, ((0, 0), (0, n_pad - nout)), constant_values=1.0)
        beta = jnp.pad(beta, ((0, 0), (0, n_pad - nout)))
    return {
        "w": w.astype(jnp.bfloat16),  # MXU-native operand, converted exactly once
        "gamma": gamma,
        "beta": beta,
        "nout": int(nout),
    }


def _bn_relu_tail(y, gamma, beta, eps, apply_relu):
    # Training-mode BatchNorm1d over the batch axis (exact full-batch statistics),
    # two-pass (numerically safer) variance; gamma folded into the rsqrt scale so
    # normalize + affine is a single fused mul-add.  All f32.
    mean = jnp.mean(y, axis=0, keepdims=True)
    centered = y - mean
    var = jnp.mean(centered * centered, axis=0, keepdims=True)
    scale = gamma * lax.rsqrt(var + eps)
    out = centered * scale + beta
    if apply_relu:
        out = jnp.maximum(out, 0.0)
    return out


def _fused_kernel(x_ref, w_ref, gamma_ref, beta_ref, o_ref, *, eps, apply_relu):
    # Path A: x resident across the nout-tile grid; cast to bf16 in-kernel
    # (no wrapper astype pass over the activations).
    x = x_ref[...].astype(jnp.bfloat16)
    y = jnp.dot(x, w_ref[...], preferred_element_type=jnp.float32)
    o_ref[...] = _bn_relu_tail(y, gamma_ref[...], beta_ref[...], eps,
                               apply_relu).astype(o_ref.dtype)


def _ktiled_kernel(x_ref, w_ref, gamma_ref, beta_ref, o_ref, acc_ref, *, eps,
                   apply_relu):
    # Path B: K-reduction fallback for large B*nin; f32 VMEM accumulator,
    # BN/ReLU finalize on the last k step.
    k = pl.program_id(1)

    @pl.when(k == 0)
    def _():
        acc_ref[...] = jnp.zeros_like(acc_ref)

    x = x_ref[...].astype(jnp.bfloat16)
    acc_ref[...] += jnp.dot(x, w_ref[...], preferred_element_type=jnp.float32)

    @pl.when(k == pl.num_programs(1) - 1)
    def _():
        o_ref[...] = _bn_relu_tail(acc_ref[...], gamma_ref[...], beta_ref[...],
                                   eps, apply_relu).astype(o_ref.dtype)


def _tile_candidates(total, tile_max):
    """128-multiple divisors of `total`, largest first, preferring >= 2 tiles."""
    tile_max = max(tile_max, _LANE)
    cands = [t for t in range(_LANE, min(tile_max, total) + 1, _LANE)
             if total % t == 0]
    cands.sort(reverse=True)
    multi = [t for t in cands if total // t >= 2]   # lets "parallel" use both v7x TCs
    single = [t for t in cands if total // t < 2]
    return multi + single


def nn_bn_relu_forward(x, params, *, relu=True, eps=1e-5, out_dtype=jnp.float32,
                       tile_n=1024, tile_k=512, force_ktiled=False):
    """x: (B, nin) float; params from prepare_params(). Returns (B, nout) out_dtype."""
    w, gamma, beta, nout = params["w"], params["gamma"], params["beta"], params["nout"]
    B, nin = x.shape
    n_pad = w.shape[1]
    out_bytes = jnp.dtype(out_dtype).itemsize

    def path_a_vmem(tn_):
        # resident f32 x (compiler may double-buffer it; budgeted at 2x to be safe)
        # + double-buffered W / gamma / beta / out tiles + f32 compute temps.
        return (2 * B * nin * 4 + 2 * nin * tn_ * 2 + 2 * B * tn_ * out_bytes
                + 4 * 2 * tn_ * 4 + 3 * B * tn_ * 4)

    cands = _tile_candidates(n_pad, tile_n)
    tn = cands[0]
    use_ktiled = force_ktiled
    if not use_ktiled:
        fits = [t for t in cands if path_a_vmem(t) <= _VMEM_BUDGET]
        if fits:
            tn = fits[0]
        elif nin % _LANE == 0:
            use_ktiled = True
        # TODO(synk): very large B*nin with nin not a multiple of 128 would need an
        # x pad along nin (or a two-pass-statistics design); not implemented.

    cost = pl.CostEstimate(
        flops=2 * B * nin * n_pad,
        transcendentals=0,
        bytes_accessed=(B * nin * 4 + nin * n_pad * 2 + 2 * n_pad * 4
                        + B * n_pad * out_bytes),
    )
    compiler_params = pltpu.CompilerParams(
        dimension_semantics=("parallel", "arbitrary") if use_ktiled
        else ("parallel",),
        vmem_limit_bytes=48 << 20,  # > 32 MiB scoped default, < v7x's 64 MiB/core
    )

    if not use_ktiled:
        kernel = functools.partial(_fused_kernel, eps=eps, apply_relu=relu)
        out_padded = pl.pallas_call(
            kernel,
            out_shape=jax.ShapeDtypeStruct((B, n_pad), out_dtype),
            grid=(n_pad // tn,),
            in_specs=[
                # Constant index_map -> x is DMA'd into VMEM once and stays resident.
                pl.BlockSpec((B, nin), lambda j: (0, 0)),
                pl.BlockSpec((nin, tn), lambda j: (0, j)),   # W tile (lane axis=nout)
                pl.BlockSpec((1, tn), lambda j: (0, j)),     # gamma tile
                pl.BlockSpec((1, tn), lambda j: (0, j)),     # beta tile
            ],
            out_specs=pl.BlockSpec((B, tn), lambda j: (0, j)),
            compiler_params=compiler_params,
            cost_estimate=cost,
        )(x, w, gamma, beta)
    else:
        tk_cands = [t for t in range(_LANE, min(max(tile_k, _LANE), nin) + 1, _LANE)
                    if nin % t == 0]
        tk = max(tk_cands) if tk_cands else nin  # full-K single step fallback
        kernel = functools.partial(_ktiled_kernel, eps=eps, apply_relu=relu)
        out_padded = pl.pallas_call(
            kernel,
            out_shape=jax.ShapeDtypeStruct((B, n_pad), out_dtype),
            grid=(n_pad // tn, nin // tk),
            in_specs=[
                pl.BlockSpec((B, tk), lambda j, k: (0, k)),
                pl.BlockSpec((tk, tn), lambda j, k: (k, j)),
                pl.BlockSpec((1, tn), lambda j, k: (0, j)),
                pl.BlockSpec((1, tn), lambda j, k: (0, j)),
            ],
            out_specs=pl.BlockSpec((B, tn), lambda j, k: (0, j)),
            scratch_shapes=[pltpu.VMEM((B, tn), jnp.float32)],
            compiler_params=compiler_params,
            cost_estimate=cost,
        )(x, w, gamma, beta)

    return out_padded[:, :nout] if n_pad != nout else out_padded


if __name__ == "__main__":
    key = jax.random.PRNGKey(0)
    kx, kw, kb, kx2, kw2, kb2 = jax.random.split(key, 6)

    def make_inputs(kx_, kw_, kb_, B, nin, nout):
        # nn.Linear default init: uniform(-1/sqrt(nin), 1/sqrt(nin)); BN: gamma=1, beta=0.
        bound = 1.0 / jnp.sqrt(jnp.float32(nin))
        w = jax.random.uniform(kw_, (nin, nout), jnp.float32, -bound, bound)  # weight.T
        b = jax.random.uniform(kb_, (1, nout), jnp.float32, -bound, bound)
        gamma = jnp.ones((1, nout), jnp.float32)
        beta = jnp.zeros((1, nout), jnp.float32)
        x = jax.random.normal(kx_, (B, nin), jnp.float32)
        return x, w, b, gamma, beta

    def reference(x, w, b, gamma, beta, relu, eps=1e-5):
        # Pure-JAX reference at matching precision (bf16 matmul, f32 accumulate).
        # The bias IS applied here, demonstrating the in-kernel drop is exact under
        # training-mode BatchNorm.
        y = jnp.dot(x.astype(jnp.bfloat16), w.astype(jnp.bfloat16),
                    preferred_element_type=jnp.float32) + b
        m = jnp.mean(y, axis=0, keepdims=True)
        v = jnp.mean((y - m) ** 2, axis=0, keepdims=True)
        out = (y - m) * lax.rsqrt(v + eps) * gamma + beta
        return jnp.maximum(out, 0.0) if relu else out

    # --- Small shapes implied by the module (path A: x resident). ---
    B, NIN, NOUT = 8, 32, 16
    x, w, b, gamma, beta = make_inputs(kx, kw, kb, B, NIN, NOUT)
    params = prepare_params(w, b, gamma, beta)  # one-time, outside the hot path

    out = jax.block_until_ready(nn_bn_relu_forward(x, params, relu=True))
    out_norelu = jax.block_until_ready(nn_bn_relu_forward(x, params, relu=False))
    assert out.shape == (B, NOUT) and out_norelu.shape == (B, NOUT)
    assert jnp.allclose(out, reference(x, w, b, gamma, beta, True),
                        atol=2e-3, rtol=2e-3), "mismatch (relu=True)"
    assert jnp.allclose(out_norelu, reference(x, w, b, gamma, beta, False),
                        atol=2e-3, rtol=2e-3), "mismatch (relu=False)"

    # Optional bf16 output (halves the (B, nout) writeback on mem-bound shapes).
    out_bf16 = jax.block_until_ready(
        nn_bn_relu_forward(x, params, relu=True, out_dtype=jnp.bfloat16))
    assert jnp.allclose(out_bf16.astype(jnp.float32),
                        reference(x, w, b, gamma, beta, True),
                        atol=2e-2, rtol=2e-2), "mismatch (bf16 output)"

    # --- K-reduction fallback (path B), exercised with 2 nout tiles x 2 nin tiles. ---
    B2, NIN2, NOUT2 = 32, 256, 192
    x2, w2, b2, gamma2, beta2 = make_inputs(kx2, kw2, kb2, B2, NIN2, NOUT2)
    params2 = prepare_params(w2, b2, gamma2, beta2)
    out2 = jax.block_until_ready(
        nn_bn_relu_forward(x2, params2, relu=True, force_ktiled=True, tile_k=128))
    assert out2.shape == (B2, NOUT2)
    assert jnp.allclose(out2, reference(x2, w2, b2, gamma2, beta2, True),
                        atol=2e-3, rtol=2e-3), "mismatch (k-tiled path)"

    print("KERNEL_OK")
</pallas_src>

<mosaic_0001>
module attributes {stable_mosaic.version = 11 : i64} {
  func.func @_fused_kernel(%arg0: i32, %arg1: memref<8x32xf32, #tpu.memory_space<vmem>>, %arg2: memref<32x128xbf16, #tpu.memory_space<vmem>>, %arg3: memref<1x128xf32, #tpu.memory_space<vmem>>, %arg4: memref<1x128xf32, #tpu.memory_space<vmem>>, %arg5: memref<8x128xf32, #tpu.memory_space<vmem>>) attributes {dimension_semantics = [#tpu.dimension_semantics<parallel>], iteration_bounds = array<i64: 1>, scalar_prefetch = 0 : i64, scratch_operands = 0 : i64, tpu.core_type = #tpu.core_type<tc>, window_params = [{pipeline_mode = #tpu.pipeline_mode<synchronous>, transform_indices = @transform_0, window_bounds = array<i64: 8, 32>}, {transform_indices = @transform_1, window_bounds = array<i64: 32, 128>}, {transform_indices = @transform_2, window_bounds = array<i64: 1, 128>}, {transform_indices = @transform_3, window_bounds = array<i64: 1, 128>}, {transform_indices = @transform_4, window_bounds = array<i64: 8, 128>}]} {
    %c0 = arith.constant 0 : index
    %c0_0 = arith.constant 0 : index
    %0 = vector.load %arg1[%c0, %c0_0] : memref<8x32xf32, #tpu.memory_space<vmem>>, vector<8x32xf32>
    %1 = arith.truncf %0 : vector<8x32xf32> to vector<8x32xbf16>
    %c0_1 = arith.constant 0 : index
    %c0_2 = arith.constant 0 : index
    %2 = vector.load %arg2[%c0_1, %c0_2] : memref<32x128xbf16, #tpu.memory_space<vmem>>, vector<32x128xbf16>
    %cst = arith.constant dense<0.000000e+00> : vector<8x128xf32>
    %3 = tpu.matmul %1, %2, %cst {dimension_numbers = #tpu.dot_dimension_numbers<[1], [0], [0], [1], [0, 0, 1, 1], [], []>} : vector<8x32xbf16>, vector<32x128xbf16>, vector<8x128xf32> -> vector<8x128xf32>
    %c0_3 = arith.constant 0 : index
    %c0_4 = arith.constant 0 : index
    %4 = vector.load %arg3[%c0_3, %c0_4] : memref<1x128xf32, #tpu.memory_space<vmem>>, vector<1x128xf32>
    %c0_5 = arith.constant 0 : index
    %c0_6 = arith.constant 0 : index
    %5 = vector.load %arg4[%c0_5, %c0_6] : memref<1x128xf32, #tpu.memory_space<vmem>>, vector<1x128xf32>
    %cst_7 = arith.constant dense<0.000000e+00> : vector<128xf32>
    %6 = vector.multi_reduction <add>, %3, %cst_7 [0] : vector<8x128xf32> to vector<128xf32>
    %7 = vector.shape_cast %6 : vector<128xf32> to vector<1x128xf32>
    %cst_8 = arith.constant 8.000000e+00 : f32
    %8 = vector.broadcast %cst_8 : f32 to vector<1x128xf32>
    %9 = arith.divf %7, %8 : vector<1x128xf32>
    %10 = vector.broadcast %9 : vector<1x128xf32> to vector<8x128xf32>
    %11 = arith.subf %3, %10 : vector<8x128xf32>
    %12 = arith.mulf %11, %11 : vector<8x128xf32>
    %cst_9 = arith.constant dense<0.000000e+00> : vector<128xf32>
    %13 = vector.multi_reduction <add>, %12, %cst_9 [0] : vector<8x128xf32> to vector<128xf32>
    %14 = vector.shape_cast %13 : vector<128xf32> to vector<1x128xf32>
    %cst_10 = arith.constant 8.000000e+00 : f32
    %15 = vector.broadcast %cst_10 : f32 to vector<1x128xf32>
    %16 = arith.divf %14, %15 : vector<1x128xf32>
    %cst_11 = arith.constant 9.99999974E-6 : f32
    %17 = vector.broadcast %cst_11 : f32 to vector<1x128xf32>
    %18 = arith.addf %16, %17 : vector<1x128xf32>
    %19 = math.rsqrt %18 : vector<1x128xf32>
    %20 = arith.mulf %4, %19 : vector<1x128xf32>
    %21 = vector.broadcast %20 : vector<1x128xf32> to vector<8x128xf32>
    %22 = arith.mulf %11, %21 : vector<8x128xf32>
    %23 = vector.broadcast %5 : vector<1x128xf32> to vector<8x128xf32>
    %24 = arith.addf %22, %23 : vector<8x128xf32>
    %cst_12 = arith.constant 0.000000e+00 : f32
    %25 = vector.broadcast %cst_12 : f32 to vector<8x128xf32>
    %26 = arith.maximumf %24, %25 : vector<8x128xf32>
    %c0_13 = arith.constant 0 : index
    %c0_14 = arith.constant 0 : index
    %27 = vector.load %arg5[%c0_13, %c0_14] : memref<8x128xf32, #tpu.memory_space<vmem>>, vector<8x128xf32>
    tpu.vector_store %arg5[%c0_13, %c0_14], %26 {strides = array<i32>} : memref<8x128xf32, #tpu.memory_space<vmem>>, vector<8x128xf32>,
    return
  }
  func.func @transform_0(%arg0: i32) -> (i32, i32) {
    %c0_i32 = arith.constant 0 : i32
    %c0_i32_0 = arith.constant 0 : i32
    %c0_i32_1 = arith.constant 0 : i32
    return %c0_i32, %c0_i32_0 : i32, i32
  }
  func.func @transform_1(%arg0: i32) -> (i32, i32) {
    %c0_i32 = arith.constant 0 : i32
    %c0_i32_0 = arith.constant 0 : i32
    return %c0_i32, %arg0 : i32, i32
  }
  func.func @transform_2(%arg0: i32) -> (i32, i32) {
    %c0_i32 = arith.constant 0 : i32
    %c0_i32_0 = arith.constant 0 : i32
    return %c0_i32, %arg0 : i32, i32
  }
  func.func @transform_3(%arg0: i32) -> (i32, i32) {
    %c0_i32 = arith.constant 0 : i32
    %c0_i32_0 = arith.constant 0 : i32
    return %c0_i32, %arg0 : i32, i32
  }
  func.func @transform_4(%arg0: i32) -> (i32, i32) {
    %c0_i32 = arith.constant 0 : i32
    %c0_i32_0 = arith.constant 0 : i32
    return %c0_i32, %arg0 : i32, i32
  }
}

</mosaic_0001>

<bundles_post_ra>
// kernel: tpu_custom_call.1
= control target key start
LH: loop header
LB: loop body
LE: loop exit
PB: predicated region body
PF: predicated region fallthrough
CT: control target
= control target key end

     0   :  { %9 = vsyncpa [#allocation3], 0  ;;  %s340_s0 = inlined_call_operand.hbm [shape: f32[8,32], index: 0, kind: input, shape index: {}]   ;;  %s341_s1 = inlined_call_operand.hbm [shape: bf16[32,128], index: 1, kind: input, shape index: {}]   ;;  %s342_s2 = inlined_call_operand.vmem [shape: f32[1,128], index: 2, kind: input, shape index: {}]   ;;  %s343_s3 = inlined_call_operand.vmem [shape: f32[1,128], index: 3, kind: input, shape index: {}]   ;;  %s344_s4 = inlined_call_operand.hbm [shape: f32[8,128], index: 4, kind: output, shape index: {}]  }
   0x1   :  { %10 = vsyncpa [#allocation6], 0 }
   0x2   :  { %11 = vsyncpa [#allocation4], 0  ;;  %s259_s15 = smov [#allocation2]   ;;  %s260_s17 = smov [#allocation5]  }
   0x3   :  { %s18_s16 = sshll.u32 %s259_s15, 4  ;;  %s27_s18 = sshll.u32 %s260_s17, 4  ;;  %s19_s16 = int_to_ptr.vmem [resolvable:$true] %s18_s16  ;;  %s291_s18 = int_to_ptr.vmem [resolvable:$true] %s27_s18 }
   0x4   :  { %s187_s21 = scalar_lea.hbm %s340_s0, 128 }
   0x5   :  { %p188_p0 = scmp.ne.s32.totalorder %s340_s0, %s187_s21  ;;  %p191_p1 = scmp.lt.u32.totalorder %s187_s21, %s340_s0 }
   0x7   :  { %p193_p2 = pnand %p191_p1, %p188_p0 }
   0x9   :  { %196 = shalt.err (!%p193_p2)
}
   0xa   :  { %s197_s26 = scalar_lea.vmem %s19_s16, 128  ;;  %p202_p4 = scmp.lt.s32.totalorder %s19_s16, %s19_s16 }
   0xb   :  { %p198_p3 = scmp.ne.s32.totalorder %s19_s16, %s197_s26  ;;  %p203_p5 = scmp.lt.s32.totalorder %s197_s26, %s197_s26 }
   0xd   :  { %p204_p6 = por %p203_p5, %p202_p4 }
   0xf   :  { %p205_p7 = pnand %p204_p6, %p198_p3 }
  0x11   :  { %208 = shalt.err (!%p205_p7)
}
  0x12   :  { %21 = dma.hbm_to_vmem [thread:$0]  %s340_s0, 128, %s19_s16, [#allocation3]  }
  0x13   :  { %s209_s5 = scalar_lea.hbm %s341_s1, 256 }
  0x14   :  { %p210_p8 = scmp.ne.s32.totalorder %s341_s1, %s209_s5  ;;  %p213_p9 = scmp.lt.u32.totalorder %s209_s5, %s341_s1 }
  0x16   :  { %p215_p10 = pnand %p213_p9, %p210_p8 }
  0x18   :  { %218 = shalt.err (!%p215_p10)
}
  0x19   :  { %s219_s10 = scalar_lea.vmem %s291_s18, 256  ;;  %p224_p12 = scmp.lt.s32.totalorder %s291_s18, %s291_s18 }
  0x1a   :  { %p220_p11 = scmp.ne.s32.totalorder %s291_s18, %s219_s10  ;;  %p225_p13 = scmp.lt.s32.totalorder %s219_s10, %s219_s10 }
  0x1c   :  { %p226_p0 = por %p225_p13, %p224_p12 }
  0x1e   :  { %p227_p1 = pnand %p226_p0, %p220_p11 }
  0x20   :  { %230 = shalt.err (!%p227_p1)
}
  0x21   :  { %s261_s0 = smov 64   ;;  %s262_s11 = smov 4  }
  0x22   :  { %33 = dma.hbm_to_vmem [thread:$0]  %s341_s1, 256, %s291_s18, [#allocation6], %s261_s0, %s261_s0, %s262_s11  }
  0x23   :  { %253 = dma.done.wait [#allocation3], 128  }
  0x24   :  { %254 = vsyncadd [#allocation3], 4294967168 }
  0x25   :  { %255 = dma.done.wait [#allocation6], 256  }
  0x26   :  { %256 = vsyncadd [#allocation6], 4294967040  ;;  %v263_v0 = vmov 0.0   ;;  %vm264_vm0 = vmmov 0   ;;  %v183_v1 = vld [vmem:[#allocation5] sm:$0xff]   ;;  %v184_v2 = vld [vmem:[#allocation5 + $0x8] sm:$0xff]   ;;  %v130_v26 = vlaneseq }
  0x27   :  { %168 = vmatprep.subr.bf16.mxu0 %v263_v0  ;;  %172 = vmatprep.mubr.msk.bf16.mxu0 %vm264_vm0, %v263_v0  ;;  %v45_v3 = vld [vmem:[#allocation2] sm:$0xff]  ;;  %vm63_vm1 = vcmask 261120   ;;  %s265_s17 = smov [#allocation7]  }
  0x28   :  { %169 = vmatpush3.bf16.msra.mxu0 %v183_v1  ;;  %v46_v4 = vpack.c.bf16 %v45_v3, %v45_v3  ;;  %v131_v27 = vshrl.u32 %v130_v26, 7  ;;  %v107_v28 = vld [vmem:[%s342_s2] sm:$0x1]  ;;  %s151_s18 = sshll.u32 %s265_s17, 4  ;;  %s152_s18 = int_to_ptr.vmem [resolvable:$true] %s151_s18 }
  0x29   :  { %170 = vmatprep.subr.bf16.mxu0 %v263_v0  ;;  %v164_v33 = vld [vmem:[%s343_s3] ss:$0 sm:$0xff]  ;;  %s231_s19 = scalar_lea.vmem %s152_s18, 128  ;;  %p236_p3 = scmp.lt.s32.totalorder %s152_s18, %s152_s18 }
  0x2a   :  { %v132_v29 = vsub.s32 0, %v131_v27  ;;  %p232_p2 = scmp.ne.s32.totalorder %s152_s18, %s231_s19  ;;  %p237_p4 = scmp.lt.s32.totalorder %s231_s19, %s231_s19 }
  0x2c   :  { %171 = vmatpush3.bf16.msra.mxu0 %v184_v2  ;;  %p238_p5 = por %p237_p4, %p236_p3 }
  0x2e   :  { %p239_p6 = pnand %p238_p5, %p232_p2 }
  0x2f   :  { %173 = vmatmul.mubr.msk.bf16.vlgmr.msra.gmra.mrb[0].mxu0 %vm63_vm1, %v46_v4 }
 0x102   :  { %v101_v5 = vpop.f32.mrb[0].mxu0 }
 0x103   :  { %v109_v6 = vrot.slane %v101_v5, 4  ;;  %v174_v7 = vpop.f32.mrb[1].mxu0 }
 0x104   :  { %v104_v8 = vpop.f32.mrb[2].mxu0 }
 0x105   :  { %v110_v9 = vadd.f32 %v109_v6, %v101_v5  ;;  %v175_v10 = vpop.f32.mrb[3].mxu0 }
 0x107   :  { %v111_v11 = vrot.slane %v110_v9, 2 }
 0x109   :  { %v112_v12 = vadd.f32 %v111_v11, %v110_v9 }
 0x10b   :  { %v113_v13 = vrot.slane %v112_v12, 1 }
 0x10d   :  { %v114_v14 = vadd.f32 %v113_v13, %v112_v12 }
 0x10f   :  { %v116_v15 = vmul.f32 0.125, %v114_v14 }
 0x111   :  { %v117_v16 = vsub.f32 %v101_v5, %v116_v15 }
 0x113   :  { %v118_v17 = vmul.f32 %v117_v16, %v117_v16 }
 0x115   :  { %v119_v18 = vrot.slane %v118_v17, 4 }
 0x117   :  { %v120_v19 = vadd.f32 %v119_v18, %v118_v17 }
 0x119   :  { %v121_v20 = vrot.slane %v120_v19, 2 }
 0x11b   :  { %v122_v21 = vadd.f32 %v121_v20, %v120_v19 }
 0x11d   :  { %v123_v22 = vrot.slane %v122_v21, 1 }
 0x11f   :  { %v124_v23 = vadd.f32 %v123_v22, %v122_v21 }
 0x121   :  { %v125_v24 = vmul.f32 0.125, %v124_v23 }
 0x123   :  { %v126_v25 = vadd.f32 1e-05, %v125_v24 }
 0x125   :  { %185 = vrsqrt.f32 %v126_v25 }
 0x12f   :  { %v186_v30 = vpop.eup %185 }
 0x130   :  { %v128_v31 = vmul.f32 %v186_v30, %v107_v28 }
 0x132   :  { %v133_v32 = vrot.slane %v128_v31, %v132_v29 }
 0x134   :  { %v135_v34 = vmul.f32 %v133_v32, %v117_v16 }
 0x136   :  { %v142_v35 = vadd.f32 %v164_v33, %v135_v34 }
 0x138   :  { %v143_v36 = vmax.f32 %v142_v35, 0.0 }
 0x13a   :  { %144 = vst [vmem:[#allocation7] sm:$0xff] %v143_v36 }
 0x13b   :  { %242 = shalt.err (!%p239_p6)
}
 0x13c   :  { %s243_s21 = scalar_lea.hbm %s344_s4, 128 }
 0x13d   :  { %p244_p7 = scmp.ne.s32.totalorder %s344_s4, %s243_s21  ;;  %p247_p8 = scmp.lt.u32.totalorder %s243_s21, %s344_s4 }
 0x13f   :  { %p249_p9 = pnand %p247_p8, %p244_p7 }
 0x141   :  { %252 = shalt.err (!%p249_p9)
}
 0x142   :  { %154 = dma.vmem_to_hbm [thread:$0]  %s152_s18, 128, %s344_s4, [#allocation4]  }
 0x143   :  { %257 = dma.done.wait [#allocation4], 128  }
 0x144   :  { %258 = vsyncadd [#allocation4], 4294967168 }
 0x145   :  { %158 = vsyncpa [#allocation3], 1 }
 0x146   :  { %159 = vsyncpa [#allocation6], 1 }
 0x147   :  { %160 = vsyncpa [#allocation4], 1 }

</bundles_post_ra>
